<compile_context>
chip_gen: v6e
topology: v6e:2x2x1
jax: 0.10.0
libtpu: 0.0.40
codegen_flags: <defaults>
</compile_context>

<pallas_src>
import functools

import jax
import jax.numpy as jnp
from jax.experimental import pallas as pl
from jax.experimental.pallas import tpu as pltpu


def _round_up(x, m):
    return ((x + m - 1) // m) * m


def _choose_block_rows(c):
    # ~1 MiB per (TN, C) f32 input block -> 2 inputs x 2 pipeline buffers plus
    # in-kernel transposed temporaries stay well below 16 MiB scoped VMEM.
    tn = (1 << 20) // (c * 4)
    tn = (tn // 128) * 128
    return int(max(128, min(1024, tn)))


def _hard_label_kernel(y_ref, yt_ref, loss_ref, mask_ref, label_ref, *,
                       threshold, n_total):
    i = pl.program_id(0)
    tn, c = y_ref.shape

    # Classes on sublanes, batch on lanes: per-sample results are lane-dense.
    y = jnp.transpose(y_ref[...].astype(jnp.float32))     # (C, TN)
    yt = jnp.transpose(yt_ref[...].astype(jnp.float32))   # (C, TN)

    cls = jax.lax.broadcasted_iota(jnp.int32, (c, tn), 0)

    # Pseudo labels: argmax over classes of the RAW logits (softmax-invariant,
    # exact float compare; first occurrence like torch.max).
    t_max = jnp.max(yt, axis=0, keepdims=True)                              # (1, TN)
    label = jnp.min(jnp.where(yt == t_max, cls, c), axis=0, keepdims=True)  # (1, TN)

    # Confidence = max softmax prob = exp(max - max) / sum = 1 / sum(exp(yt - max)).
    denom = jnp.sum(jnp.exp(yt - t_max), axis=0, keepdims=True)             # (1, TN)
    conf = pl.reciprocal(denom)                                             # exact
    mask = (conf > threshold).astype(jnp.float32)                           # (1, TN)

    # Cross entropy at the pseudo label: -log_softmax(y)[label].
    y_max = jnp.max(y, axis=0, keepdims=True)
    y_shift = y - y_max
    lse = jnp.log(jnp.sum(jnp.exp(y_shift), axis=0, keepdims=True))         # (1, TN)
    onehot = (cls == label).astype(jnp.float32)                             # (C, TN)
    ce = lse - jnp.sum(onehot * y_shift, axis=0, keepdims=True)             # (1, TN)

    # Rows past the true batch size are zero padding -> exclude from the loss.
    row = jax.lax.broadcasted_iota(jnp.int32, (1, tn), 1) + i * tn
    valid = (row < n_total).astype(jnp.float32)

    @pl.when(i == 0)
    def _():
        loss_ref[...] = jnp.zeros_like(loss_ref)

    loss_ref[...] += jnp.sum(ce * mask * valid, keepdims=True)

    @pl.when(i == pl.num_programs(0) - 1)
    def _():
        loss_ref[...] = loss_ref[...] / float(n_total)

    mask_ref[...] = mask
    label_ref[...] = label


def _soft_label_kernel(y_ref, yt_ref, loss_ref, *, n_total):
    i = pl.program_id(0)
    tn, c = y_ref.shape

    y = jnp.transpose(y_ref[...].astype(jnp.float32))     # (C, TN)
    yt = jnp.transpose(yt_ref[...].astype(jnp.float32))   # (C, TN)

    # Soft targets = softmax(y_target): reciprocal + multiply (no (N,C) divide).
    t_max = jnp.max(yt, axis=0, keepdims=True)
    t_exp = jnp.exp(yt - t_max)
    inv = pl.reciprocal(jnp.sum(t_exp, axis=0, keepdims=True))
    probs = t_exp * inv                                     # (C, TN)

    # log_softmax(y)
    y_max = jnp.max(y, axis=0, keepdims=True)
    y_shift = y - y_max
    lse = jnp.log(jnp.sum(jnp.exp(y_shift), axis=0, keepdims=True))
    logp = y_shift - lse                                    # (C, TN)

    ce = -jnp.sum(probs * logp, axis=0, keepdims=True)      # (1, TN)

    row = jax.lax.broadcasted_iota(jnp.int32, (1, tn), 1) + i * tn
    valid = (row < n_total).astype(jnp.float32)

    @pl.when(i == 0)
    def _():
        loss_ref[...] = jnp.zeros_like(loss_ref)

    loss_ref[...] += jnp.sum(ce * valid, keepdims=True)

    @pl.when(i == pl.num_programs(0) - 1)
    def _():
        loss_ref[...] = loss_ref[...] / float(n_total)


def confidence_based_self_training_loss(y, y_target, threshold, use_soft_label,
                                        block_rows=None):
    """Mirrors ConfidenceBasedSelfTrainingLoss.forward.

    Returns (self_training_loss, mask, pseudo_labels); mask / pseudo_labels are
    None in soft-label mode, exactly like the PyTorch module.
    """
    n, c = y.shape
    if block_rows is None:
        block_rows = _choose_block_rows(c)

    if n <= block_rows:
        tn = _round_up(n, 8)          # single tile == full (padded) array
    else:
        assert block_rows % 128 == 0, "multi-tile block_rows must be 128-aligned"
        tn = block_rows
    n_pad = _round_up(n, tn)

    if n_pad != n:
        pad = ((0, n_pad - n), (0, 0))
        y = jnp.pad(y, pad)
        y_target = jnp.pad(y_target, pad)

    grid = (n_pad // tn,)
    in_specs = [pl.BlockSpec((tn, c), lambda i: (i, 0)),
                pl.BlockSpec((tn, c), lambda i: (i, 0))]
    # Single reduction axis carrying the resident (1,1) loss accumulator; kept
    # "arbitrary" (a per-core partial-loss split would enable v7x megacore but
    # is unnecessary at these sizes).
    params = pltpu.CompilerParams(dimension_semantics=("arbitrary",))

    if use_soft_label:
        loss = pl.pallas_call(
            functools.partial(_soft_label_kernel, n_total=n),
            grid=grid,
            in_specs=in_specs,
            out_specs=pl.BlockSpec((1, 1), lambda i: (0, 0)),
            out_shape=jax.ShapeDtypeStruct((1, 1), jnp.float32),
            compiler_params=params,
        )(y, y_target)
        return loss[0, 0], None, None

    loss, mask, labels = pl.pallas_call(
        functools.partial(_hard_label_kernel,
                          threshold=float(threshold), n_total=n),
        grid=grid,
        in_specs=in_specs,
        out_specs=(
            pl.BlockSpec((1, 1), lambda i: (0, 0)),
            pl.BlockSpec((1, tn), lambda i: (0, i)),   # lane-dense per-sample out
            pl.BlockSpec((1, tn), lambda i: (0, i)),
        ),
        out_shape=(
            jax.ShapeDtypeStruct((1, 1), jnp.float32),
            jax.ShapeDtypeStruct((1, n_pad), jnp.float32),
            jax.ShapeDtypeStruct((1, n_pad), jnp.int32),
        ),
        compiler_params=params,
    )(y, y_target)
    return loss[0, 0], mask[0, :n], labels[0, :n]


def _reference(y, y_target, threshold, use_soft_label):
    """Pure-JAX reference matching the PyTorch semantics."""
    logp = jax.nn.log_softmax(y, axis=1)
    probs = jax.nn.softmax(y_target, axis=1)
    if use_soft_label:
        return jnp.mean(-jnp.sum(probs * logp, axis=1)), None, None
    conf = jnp.max(probs, axis=1)
    labels = jnp.argmax(y_target, axis=1)
    mask = (conf > threshold).astype(jnp.float32)
    ce = -jnp.take_along_axis(logp, labels[:, None], axis=1)[:, 0]
    return jnp.mean(ce * mask), mask, labels


if __name__ == "__main__":
    key = jax.random.PRNGKey(0)
    k1, k2 = jax.random.split(key)
    threshold = 0.4

    # Small single-tile case (minibatch=8, C=16).
    N, C = 8, 16
    y = jax.random.normal(k1, (N, C), dtype=jnp.float32) * 2.0
    y_target = jax.random.normal(k2, (N, C), dtype=jnp.float32) * 2.0

    loss_h, mask_h, labels_h = confidence_based_self_training_loss(
        y, y_target, threshold, use_soft_label=False)
    jax.block_until_ready((loss_h, mask_h, labels_h))
    ref_loss_h, ref_mask_h, ref_labels_h = _reference(y, y_target, threshold, False)
    assert jnp.allclose(loss_h, ref_loss_h, atol=1e-5, rtol=1e-5), (loss_h, ref_loss_h)
    assert jnp.array_equal(mask_h, ref_mask_h)
    assert jnp.array_equal(labels_h, ref_labels_h)

    loss_s, mask_s, labels_s = confidence_based_self_training_loss(
        y, y_target, threshold, use_soft_label=True)
    jax.block_until_ready(loss_s)
    ref_loss_s, _, _ = _reference(y, y_target, threshold, True)
    assert mask_s is None and labels_s is None
    assert jnp.allclose(loss_s, ref_loss_s, atol=1e-5, rtol=1e-5), (loss_s, ref_loss_s)

    # Multi-tile case: exercises the grid accumulator, row padding and the
    # lane-dense per-tile mask/label outputs (block_rows forced small -> grid=3).
    N2, C2 = 300, 16
    k3, k4 = jax.random.split(k1)
    y2 = jax.random.normal(k3, (N2, C2), dtype=jnp.float32) * 2.0
    yt2 = jax.random.normal(k4, (N2, C2), dtype=jnp.float32) * 2.0

    loss2, mask2, labels2 = confidence_based_self_training_loss(
        y2, yt2, threshold, use_soft_label=False, block_rows=128)
    jax.block_until_ready((loss2, mask2, labels2))
    rl2, rm2, rlab2 = _reference(y2, yt2, threshold, False)
    assert jnp.allclose(loss2, rl2, atol=1e-5, rtol=1e-5), (loss2, rl2)
    assert jnp.array_equal(mask2, rm2)
    assert jnp.array_equal(labels2, rlab2)

    loss2s, _, _ = confidence_based_self_training_loss(
        y2, yt2, threshold, use_soft_label=True, block_rows=128)
    jax.block_until_ready(loss2s)
    rl2s, _, _ = _reference(y2, yt2, threshold, True)
    assert jnp.allclose(loss2s, rl2s, atol=1e-5, rtol=1e-5), (loss2s, rl2s)

    print("KERNEL_OK")
</pallas_src>

<mosaic_0001>
module attributes {stable_mosaic.version = 11 : i64} {
  func.func @_hard_label_kernel(%arg0: i32, %arg1: memref<8x16xf32, #tpu.memory_space<vmem>>, %arg2: memref<8x16xf32, #tpu.memory_space<vmem>>, %arg3: memref<1x1xf32, #tpu.memory_space<vmem>>, %arg4: memref<1x8xf32, #tpu.memory_space<vmem>>, %arg5: memref<1x8xi32, #tpu.memory_space<vmem>>) attributes {dimension_semantics = [#tpu.dimension_semantics<arbitrary>], iteration_bounds = array<i64: 1>, scalar_prefetch = 0 : i64, scratch_operands = 0 : i64, tpu.core_type = #tpu.core_type<tc>, window_params = [{transform_indices = @transform_0, window_bounds = array<i64: 8, 16>}, {transform_indices = @transform_1, window_bounds = array<i64: 8, 16>}, {pipeline_mode = #tpu.pipeline_mode<synchronous>, transform_indices = @transform_2, window_bounds = array<i64: 1, 1>}, {transform_indices = @transform_3, window_bounds = array<i64: 1, 8>}, {transform_indices = @transform_4, window_bounds = array<i64: 1, 8>}]} {
    %c0 = arith.constant 0 : index
    %c0_0 = arith.constant 0 : index
    %0 = vector.load %arg1[%c0, %c0_0] : memref<8x16xf32, #tpu.memory_space<vmem>>, vector<8x16xf32>
    %1 = tpu.transpose %0, [1, 0] : vector<8x16xf32> -> vector<16x8xf32>
    %c0_1 = arith.constant 0 : index
    %c0_2 = arith.constant 0 : index
    %2 = vector.load %arg2[%c0_1, %c0_2] : memref<8x16xf32, #tpu.memory_space<vmem>>, vector<8x16xf32>
    %3 = tpu.transpose %2, [1, 0] : vector<8x16xf32> -> vector<16x8xf32>
    %4 = tpu.iota {dimensions = array<i32: 0>} : vector<16x8xi32>
    %cst = arith.constant dense<0xFF800000> : vector<8xf32>
    %5 = vector.multi_reduction <maximumf>, %3, %cst [0] : vector<16x8xf32> to vector<8xf32>
    %6 = vector.shape_cast %5 : vector<8xf32> to vector<1x8xf32>
    %7 = vector.broadcast %6 : vector<1x8xf32> to vector<16x8xf32>
    %8 = arith.cmpf oeq, %3, %7 : vector<16x8xf32>
    %c16_i32 = arith.constant 16 : i32
    %9 = vector.broadcast %c16_i32 : i32 to vector<16x8xi32>
    %10 = arith.select %8, %4, %9 : vector<16x8xi1>, vector<16x8xi32>
    %cst_3 = arith.constant dense<2147483647> : vector<8xi32>
    %11 = vector.multi_reduction <minsi>, %10, %cst_3 [0] : vector<16x8xi32> to vector<8xi32>
    %12 = vector.shape_cast %11 : vector<8xi32> to vector<1x8xi32>
    %13 = vector.broadcast %6 : vector<1x8xf32> to vector<16x8xf32>
    %14 = arith.subf %3, %13 : vector<16x8xf32>
    %15 = math.exp %14 : vector<16x8xf32>
    %cst_4 = arith.constant dense<0.000000e+00> : vector<8xf32>
    %16 = vector.multi_reduction <add>, %15, %cst_4 [0] : vector<16x8xf32> to vector<8xf32>
    %17 = vector.shape_cast %16 : vector<8xf32> to vector<1x8xf32>
    %18 = tpu.reciprocal %17 : vector<1x8xf32> -> vector<1x8xf32>
    %cst_5 = arith.constant 4.000000e-01 : f32
    %19 = vector.broadcast %cst_5 : f32 to vector<1x8xf32>
    %20 = arith.cmpf ogt, %18, %19 : vector<1x8xf32>
    %21 = arith.extui %20 : vector<1x8xi1> to vector<1x8xi32>
    %22 = arith.sitofp %21 : vector<1x8xi32> to vector<1x8xf32>
    %cst_6 = arith.constant dense<0xFF800000> : vector<8xf32>
    %23 = vector.multi_reduction <maximumf>, %1, %cst_6 [0] : vector<16x8xf32> to vector<8xf32>
    %24 = vector.shape_cast %23 : vector<8xf32> to vector<1x8xf32>
    %25 = vector.broadcast %24 : vector<1x8xf32> to vector<16x8xf32>
    %26 = arith.subf %1, %25 : vector<16x8xf32>
    %27 = math.exp %26 : vector<16x8xf32>
    %cst_7 = arith.constant dense<0.000000e+00> : vector<8xf32>
    %28 = vector.multi_reduction <add>, %27, %cst_7 [0] : vector<16x8xf32> to vector<8xf32>
    %29 = vector.shape_cast %28 : vector<8xf32> to vector<1x8xf32>
    %30 = math.log %29 : vector<1x8xf32>
    %31 = vector.broadcast %12 : vector<1x8xi32> to vector<16x8xi32>
    %32 = arith.cmpi eq, %4, %31 : vector<16x8xi32>
    %33 = arith.extui %32 : vector<16x8xi1> to vector<16x8xi32>
    %34 = arith.sitofp %33 : vector<16x8xi32> to vector<16x8xf32>
    %35 = arith.mulf %34, %26 : vector<16x8xf32>
    %cst_8 = arith.constant dense<0.000000e+00> : vector<8xf32>
    %36 = vector.multi_reduction <add>, %35, %cst_8 [0] : vector<16x8xf32> to vector<8xf32>
    %37 = vector.shape_cast %36 : vector<8xf32> to vector<1x8xf32>
    %38 = arith.subf %30, %37 : vector<1x8xf32>
    %39 = tpu.iota {dimensions = array<i32: 1>} : vector<1x8xi32>
    %c8_i32 = arith.constant 8 : i32
    %40 = arith.muli %arg0, %c8_i32 : i32
    %41 = vector.broadcast %40 : i32 to vector<1x8xi32>
    %42 = arith.addi %39, %41 : vector<1x8xi32>
    %c8_i32_9 = arith.constant 8 : i32
    %43 = vector.broadcast %c8_i32_9 : i32 to vector<1x8xi32>
    %44 = arith.cmpi slt, %42, %43 : vector<1x8xi32>
    %45 = arith.extui %44 : vector<1x8xi1> to vector<1x8xi32>
    %46 = arith.sitofp %45 : vector<1x8xi32> to vector<1x8xf32>
    %c0_i32 = arith.constant 0 : i32
    %47 = arith.cmpi eq, %arg0, %c0_i32 : i32
    %48 = arith.extui %47 : i1 to i32
    %c0_i32_10 = arith.constant 0 : i32
    %49 = arith.cmpi ne, %48, %c0_i32_10 : i32
    scf.if %49 {
      %cst_22 = arith.constant 0.000000e+00 : f32
      %65 = vector.broadcast %cst_22 : f32 to vector<1x1xf32>
      %c0_23 = arith.constant 0 : index
      %c0_24 = arith.constant 0 : index
      %66 = vector.load %arg3[%c0_23, %c0_24] : memref<1x1xf32, #tpu.memory_space<vmem>>, vector<1x1xf32>
      tpu.vector_store %arg3[%c0_23, %c0_24], %65 {strides = array<i32>} : memref<1x1xf32, #tpu.memory_space<vmem>>, vector<1x1xf32>,
    } else {
    }
    %c0_11 = arith.constant 0 : index
    %c0_12 = arith.constant 0 : index
    %50 = vector.load %arg3[%c0_11, %c0_12] : memref<1x1xf32, #tpu.memory_space<vmem>>, vector<1x1xf32>
    %51 = arith.mulf %38, %22 : vector<1x8xf32>
    %52 = arith.mulf %51, %46 : vector<1x8xf32>
    %53 = vector.shape_cast %52 : vector<1x8xf32> to vector<1x1x8xf32>
    %cst_13 = arith.constant dense<0.000000e+00> : vector<1xf32>
    %54 = vector.multi_reduction <add>, %53, %cst_13 [1, 2] : vector<1x1x8xf32> to vector<1xf32>
    %55 = vector.shape_cast %54 : vector<1xf32> to vector<1x1x1xf32>
    %56 = vector.extract %55[0, 0, 0] : f32 from vector<1x1x1xf32>
    %57 = vector.broadcast %56 : f32 to vector<1x1xf32>
    %58 = arith.addf %50, %57 : vector<1x1xf32>
    %c0_14 = arith.constant 0 : index
    %c0_15 = arith.constant 0 : index
    %59 = vector.load %arg3[%c0_14, %c0_15] : memref<1x1xf32, #tpu.memory_space<vmem>>, vector<1x1xf32>
    tpu.vector_store %arg3[%c0_14, %c0_15], %58 {strides = array<i32>} : memref<1x1xf32, #tpu.memory_space<vmem>>, vector<1x1xf32>,
    %c0_i32_16 = arith.constant 0 : i32
    %60 = arith.cmpi eq, %arg0, %c0_i32_16 : i32
    %61 = arith.extui %60 : i1 to i32
    %c0_i32_17 = arith.constant 0 : i32
    %62 = arith.cmpi ne, %61, %c0_i32_17 : i32
    scf.if %62 {
      %c0_22 = arith.constant 0 : index
      %c0_23 = arith.constant 0 : index
      %65 = vector.load %arg3[%c0_22, %c0_23] : memref<1x1xf32, #tpu.memory_space<vmem>>, vector<1x1xf32>
      %cst_24 = arith.constant 8.000000e+00 : f32
      %66 = vector.broadcast %cst_24 : f32 to vector<1x1xf32>
      %67 = arith.divf %65, %66 : vector<1x1xf32>
      %c0_25 = arith.constant 0 : index
      %c0_26 = arith.constant 0 : index
      %68 = vector.load %arg3[%c0_25, %c0_26] : memref<1x1xf32, #tpu.memory_space<vmem>>, vector<1x1xf32>
      tpu.vector_store %arg3[%c0_25, %c0_26], %67 {strides = array<i32>} : memref<1x1xf32, #tpu.memory_space<vmem>>, vector<1x1xf32>,
    } else {
    }
    %c0_18 = arith.constant 0 : index
    %c0_19 = arith.constant 0 : index
    %63 = vector.load %arg4[%c0_18, %c0_19] : memref<1x8xf32, #tpu.memory_space<vmem>>, vector<1x8xf32>
    tpu.vector_store %arg4[%c0_18, %c0_19], %22 {strides = array<i32>} : memref<1x8xf32, #tpu.memory_space<vmem>>, vector<1x8xf32>,
    %c0_20 = arith.constant 0 : index
    %c0_21 = arith.constant 0 : index
    %64 = vector.load %arg5[%c0_20, %c0_21] : memref<1x8xi32, #tpu.memory_space<vmem>>, vector<1x8xi32>
    tpu.vector_store %arg5[%c0_20, %c0_21], %12 {strides = array<i32>} : memref<1x8xi32, #tpu.memory_space<vmem>>, vector<1x8xi32>,
    return
  }
  func.func @transform_0(%arg0: i32) -> (i32, i32) {
    %c0_i32 = arith.constant 0 : i32
    %c0_i32_0 = arith.constant 0 : i32
    return %arg0, %c0_i32 : i32, i32
  }
  func.func @transform_1(%arg0: i32) -> (i32, i32) {
    %c0_i32 = arith.constant 0 : i32
    %c0_i32_0 = arith.constant 0 : i32
    return %arg0, %c0_i32 : i32, i32
  }
  func.func @transform_2(%arg0: i32) -> (i32, i32) {
    %c0_i32 = arith.constant 0 : i32
    %c0_i32_0 = arith.constant 0 : i32
    %c0_i32_1 = arith.constant 0 : i32
    return %c0_i32, %c0_i32_0 : i32, i32
  }
  func.func @transform_3(%arg0: i32) -> (i32, i32) {
    %c0_i32 = arith.constant 0 : i32
    %c0_i32_0 = arith.constant 0 : i32
    return %c0_i32, %arg0 : i32, i32
  }
  func.func @transform_4(%arg0: i32) -> (i32, i32) {
    %c0_i32 = arith.constant 0 : i32
    %c0_i32_0 = arith.constant 0 : i32
    return %c0_i32, %arg0 : i32, i32
  }
}

</mosaic_0001>

<bundles_post_ra>
// kernel: tpu_custom_call.1
= control target key start
LH: loop header
LB: loop body
LE: loop exit
PB: predicated region body
PF: predicated region fallthrough
CT: control target
= control target key end

     0   :  { %10 = vsyncpa [#allocation3], 0  ;;  %s481_s0 = inlined_call_operand.hbm [shape: f32[8,16], index: 0, kind: input, shape index: {}]   ;;  %s482_s1 = inlined_call_operand.hbm [shape: f32[8,16], index: 1, kind: input, shape index: {}]   ;;  %s483_s2 = inlined_call_operand.hbm [shape: f32[1,1], index: 2, kind: output, shape index: {0}]   ;;  %s484_s3 = inlined_call_operand.hbm [shape: f32[1,8], index: 3, kind: output, shape index: {1}]   ;;  %s485_s4 = inlined_call_operand.hbm [shape: s32[1,8], index: 4, kind: output, shape index: {2}]  }
   0x1   :  { %11 = vsyncpa [#allocation6], 0 }
   0x2   :  { %12 = vsyncpa [#allocation4], 0 }
   0x3   :  { %13 = vsyncpa [#allocation9], 0  ;;  %s415_s15 = smov [#allocation2]   ;;  %s416_s17 = smov [#allocation5]  }
   0x4   :  { %s20_s16 = sshll.u32 %s415_s15, 4  ;;  %s30_s18 = sshll.u32 %s416_s17, 4  ;;  %s21_s16 = int_to_ptr.vmem [resolvable:$true] %s20_s16  ;;  %s31_s18 = int_to_ptr.vmem [resolvable:$true] %s30_s18 }
   0x5   :  { %s315_s19 = scalar_lea.vmem %s21_s16, 128  ;;  %p320_p1 = scmp.lt.s32.totalorder %s21_s16, %s21_s16 }
   0x6   :  { %p316_p0 = scmp.ne.s32.totalorder %s21_s16, %s315_s19  ;;  %p321_p2 = scmp.lt.s32.totalorder %s315_s19, %s315_s19 }
   0x8   :  { %p322_p3 = por %p321_p2, %p320_p1 }
   0xa   :  { %p323_p4 = pnand %p322_p3, %p316_p0 }
   0xc   :  { %326 = shalt.err (!%p323_p4)
}
   0xd   :  { %23 = dma.hbm_to_vmem [thread:$0]  %s481_s0, 128, %s21_s16, [#allocation3]  }
   0xe   :  { %s335_s22 = scalar_lea.vmem %s31_s18, 128  ;;  %p340_p6 = scmp.lt.s32.totalorder %s31_s18, %s31_s18 }
   0xf   :  { %p336_p5 = scmp.ne.s32.totalorder %s31_s18, %s335_s22  ;;  %p341_p7 = scmp.lt.s32.totalorder %s335_s22, %s335_s22 }
  0x11   :  { %p342_p8 = por %p341_p7, %p340_p6 }
  0x13   :  { %p343_p9 = pnand %p342_p8, %p336_p5 }
  0x15   :  { %346 = shalt.err (!%p343_p9)
}
  0x16   :  { %33 = dma.hbm_to_vmem [thread:$0]  %s482_s1, 128, %s31_s18, [#allocation6]  }
  0x17   :  { %407 = dma.done.wait [#allocation3], 128  }
  0x18   :  { %408 = vsyncadd [#allocation3], 4294967168 }
  0x19   :  { %409 = dma.done.wait [#allocation6], 128  }
  0x1a   :  { %410 = vsyncadd [#allocation6], 4294967168  ;;  %v40_v0 = vld [vmem:[#allocation2] sm:$0xff]  ;;  %v73_v1 = vld [vmem:[#allocation5] sm:$0xff]  ;;  %vm109_vm0 = vcmask 64512   ;;  %v106_v18 = vlaneseq  ;;  %vm216_vm6 = vcmask 57344  }
  0x1b   :  { %41 = vxpose.xlu0.b32.start.end [1/1] (short) (narrow) %v40_v0, 16  ;;  %v417_v55 = vmov 0.0   ;;  %vm211_vm12 = vcmask 0   ;;  %s418_s0 = smov [#allocation8]  }
  0x1c   :  { %v107_v24 = vshrl.u32 %v106_v18, 7  ;;  %212 = vst.msk [vmem:[#allocation7] sm:$0x1] %vm211_vm12, %v417_v55  ;;  %s256_s1 = sshll.u32 %s418_s0, 4  ;;  %s257_s1 = int_to_ptr.vmem [resolvable:$true] %s256_s1 }
  0x1d   :  { %s347_s25 = scalar_lea.vmem %s257_s1, 16  ;;  %s351_s26 = scalar_lea.vmem %s257_s1, 32 }
  0x1e   :  { %v108_v29 = vadd.s32 8, %v107_v24  ;;  %p348_p10 = scmp.ne.s32.totalorder %s257_s1, %s347_s25  ;;  %p352_p11 = scmp.lt.s32.totalorder %s257_s1, %s257_s1 }
  0x1f   :  { %p353_p12 = scmp.lt.s32.totalorder %s351_s26, %s347_s25 }
  0x20   :  { %74 = vxpose.xlu0.b32.start.end [1/1] (short) (narrow) %v73_v1, 16 }
  0x21   :  { %p354_p13 = por %p353_p12, %p352_p11 }
  0x23   :  { %p355_p0 = pnand %p354_p13, %p348_p10 }
  0x97   :  { %v57_v2 = vpop.trf.xlu0 }
  0x98   :  { %v155_v4 = vsel %vm109_vm0, %v57_v2, -inf }
  0x9b   :  { %v58_v3 = vpop.trf.xlu0 }
  0x9c   :  { %v156_v5 = vsel %vm109_vm0, %v58_v3, -inf }
  0x9d   :  { %v157_v6 = vmax.f32 %v155_v4, %v156_v5 }
  0x9f   :  { %v158_v7 = vrot.slane %v157_v6, 4  ;;  %v90_v8 = vpop.trf.xlu0 }
  0xa0   :  { %v110_v12 = vsel %vm109_vm0, %v90_v8, -inf }
  0xa1   :  { %v159_v9 = vmax.f32 %v157_v6, %v158_v7 }
  0xa3   :  { %v160_v10 = vrot.slane %v159_v9, 2  ;;  %v91_v11 = vpop.trf.xlu0 }
  0xa4   :  { %v111_v13 = vsel %vm109_vm0, %v91_v11, -inf }
  0xa5   :  { %v161_v14 = vmax.f32 %v159_v9, %v160_v10  ;;  %v112_v15 = vmax.f32 %v110_v12, %v111_v13 }
  0xa7   :  { %v162_v16 = vrot.slane %v161_v14, 1  ;;  %v113_v17 = vrot.slane %v112_v15, 4 }
  0xa9   :  { %v163_v19 = vmax.f32 %v161_v14, %v162_v16  ;;  %v114_v20 = vmax.f32 %v112_v15, %v113_v17 }
  0xab   :  { %v164_v21 = vsub.f32 %v57_v2, %v163_v19  ;;  %v165_v22 = vsub.f32 %v58_v3, %v163_v19  ;;  %v115_v23 = vrot.slane %v114_v20, 2  ;;  %v200_v19 = vand.u32 127, %v106_v18 }
  0xad   :  { %v166_v25 = vmul.f32 1.442695, %v164_v21  ;;  %v168_v26 = vmul.f32 1.442695, %v165_v22  ;;  %v116_v27 = vmax.f32 %v114_v20, %v115_v23  ;;  %vm204_vm10 = vcmp.lt.s32.totalorder %v200_v19, 8 }
  0xaf   :  { %295 = vpow2.f32 %v166_v25  ;;  %v117_v28 = vrot.slane %v116_v27, 1  ;;  %v286_v25 = vsel %vm204_vm10, 1.0, %v417_v55 }
  0xb0   :  { %297 = vpow2.f32 %v168_v26 }
  0xb1   :  { %v118_v30 = vmax.f32 %v116_v27, %v117_v28 }
  0xb3   :  { %vm119_vm1 = vcmp.eq.f32.partialorder %v90_v8, %v118_v30  ;;  %vm120_vm2 = vcmp.eq.f32.partialorder %v91_v11, %v118_v30  ;;  %v136_v31 = vsub.f32 %v90_v8, %v118_v30  ;;  %v137_v32 = vsub.f32 %v91_v11, %v118_v30 }
  0xb4   :  { %v121_v33 = vsel %vm119_vm1, %v107_v24, 16  ;;  %v122_v34 = vsel %vm120_vm2, %v108_v29, 16 }
  0xb5   :  { %v123_v35 = vsel %vm109_vm0, %v121_v33, 2147483647  ;;  %v124_v36 = vsel %vm109_vm0, %v122_v34, 2147483647  ;;  %v138_v37 = vmul.f32 1.442695, %v136_v31 }
  0xb6   :  { %vm125_vm3 = vcmp.lt.s32.totalorder %v123_v35, %v124_v36  ;;  %v140_v38 = vmul.f32 1.442695, %v137_v32 }
  0xb7   :  { %v126_v39 = vsel %vm125_vm3, %v123_v35, %v124_v36  ;;  %299 = vpow2.f32 %v138_v37 }
  0xb8   :  { %v127_v40 = vrot.slane %v126_v39, 4  ;;  %301 = vpow2.f32 %v140_v38 }
  0xba   :  { %vm128_vm4 = vcmp.lt.s32.totalorder %v126_v39, %v127_v40 }
  0xbb   :  { %v129_v41 = vsel %vm128_vm4, %v126_v39, %v127_v40 }
  0xbc   :  { %v296_v42 = vpop.eup %295  ;;  %v130_v43 = vrot.slane %v129_v41, 2 }
  0xbd   :  { %v298_v44 = vpop.eup %297  ;;  %v170_v45 = vsel %vm109_vm0, %v296_v42, 0.0 }
  0xbe   :  { %v171_v46 = vsel %vm109_vm0, %v298_v44, 0.0  ;;  %vm131_vm5 = vcmp.lt.s32.totalorder %v129_v41, %v130_v43 }
  0xbf   :  { %v132_v47 = vsel %vm131_vm5, %v129_v41, %v130_v43  ;;  %v172_v48 = vadd.f32 %v171_v46, %v170_v45 }
  0xc0   :  { %v133_v49 = vrot.slane %v132_v47, 1 }
  0xc1   :  { %v173_v50 = vrot.slane %v172_v48, 4 }
  0xc2   :  { %vm134_vm7 = vcmp.lt.s32.totalorder %v132_v47, %v133_v49 }
  0xc3   :  { %v135_v51 = vsel %vm134_vm7, %v132_v47, %v133_v49  ;;  %v174_v52 = vadd.f32 %v173_v50, %v172_v48 }
  0xc4   :  { %v300_v53 = vpop.eup %299  ;;  %vm181_vm8 = vcmp.eq.s32.totalorder %v107_v24, %v135_v51  ;;  %vm182_vm9 = vcmp.eq.s32.totalorder %v108_v29, %v135_v51  ;;  %239 = vst.msk [vmem:[#allocation10] sm:$0x1] %vm216_vm6, %v135_v51 }
  0xc5   :  { %v302_v54 = vpop.eup %301  ;;  %v284_v56 = vsel %vm181_vm8, 1.0, %v417_v55  ;;  %v285_v57 = vsel %vm182_vm9, 1.0, %v417_v55  ;;  %v142_v58 = vsel %vm109_vm0, %v300_v53, 0.0  ;;  %v175_v59 = vrot.slane %v174_v52, 2 }
  0xc6   :  { %v187_v60 = vmul.f32 %v284_v56, %v164_v21  ;;  %v188_v61 = vmul.f32 %v285_v57, %v165_v22  ;;  %v143_v62 = vsel %vm109_vm0, %v302_v54, 0.0 }
  0xc7   :  { %v144_v63 = vadd.f32 %v143_v62, %v142_v58  ;;  %v176_v0 = vadd.f32 %v175_v59, %v174_v52 }
  0xc8   :  { %v189_v1 = vsel %vm109_vm0, %v187_v60, 0.0  ;;  %v190_v2 = vsel %vm109_vm0, %v188_v61, 0.0 }
  0xc9   :  { %v191_v3 = vadd.f32 %v190_v2, %v189_v1  ;;  %v145_v4 = vrot.slane %v144_v63, 4  ;;  %v177_v5 = vrot.slane %v176_v0, 1 }
  0xcb   :  { %v146_v6 = vadd.f32 %v145_v4, %v144_v63  ;;  %v178_v7 = vadd.f32 %v177_v5, %v176_v0  ;;  %v192_v9 = vrot.slane %v191_v3, 4 }
  0xcd   :  { %v147_v8 = vrot.slane %v146_v6, 2  ;;  %303 = vlog2.f32 %v178_v7  ;;  %v193_v12 = vadd.f32 %v192_v9, %v191_v3 }
  0xcf   :  { %v148_v10 = vadd.f32 %v147_v8, %v146_v6  ;;  %v194_v14 = vrot.slane %v193_v12, 2 }
  0xd1   :  { %v149_v11 = vrot.slane %v148_v10, 1  ;;  %v195_v15 = vadd.f32 %v194_v14, %v193_v12 }
  0xd3   :  { %v150_v13 = vadd.f32 %v149_v11, %v148_v10  ;;  %v196_v17 = vrot.slane %v195_v15, 1 }
  0xd5   :  { %305 = vrcp.f32 %v150_v13  ;;  %v197_v21 = vadd.f32 %v196_v17, %v195_v15 }
  0xda   :  { %v304_v16 = vpop.eup %303 }
  0xdb   :  { %v180_v20 = vmul.f32 0.6931472, %v304_v16 }
  0xdd   :  { %v198_v23 = vsub.f32 %v180_v20, %v197_v21 }
  0xe2   :  { %v306_v22 = vpop.eup %305 }
  0xe3   :  { %vm152_vm11 = vcmp.gt.f32.partialorder %v306_v22, 0.4 }
  0xe4   :  { %v283_v24 = vsel %vm152_vm11, 1.0, %v417_v55 }
  0xe5   :  { %v214_v26 = vmul.f32 %v283_v24, %v198_v23  ;;  %238 = vst.msk [vmem:[#allocation8] sm:$0x1] %vm216_vm6, %v283_v24 }
  0xe7   :  { %v215_v27 = vmul.f32 %v286_v25, %v214_v26 }
  0xe9   :  { %v217_v28 = vsel %vm216_vm6, %v215_v27, 0.0 }
  0xea   :  { %218 = vadd.xlane.f32.xlu1 %v217_v28 }
  0xeb   :  { %358 = shalt.err (!%p355_p0)
}
  0xec   :  { %259 = dma.vmem_to_hbm [thread:$0]  %s257_s1, 16, %s484_s3, [#allocation9]  }
  0xed   :  { %s419_s29 = smov [#allocation10]  }
  0xee   :  { %s266_s30 = sshll.u32 %s419_s29, 4  ;;  %s267_s30 = int_to_ptr.vmem [resolvable:$true] %s266_s30 }
  0xef   :  { %s367_s5 = scalar_lea.vmem %s267_s30, 16  ;;  %s371_s6 = scalar_lea.vmem %s267_s30, 32 }
  0xf0   :  { %p368_p1 = scmp.ne.s32.totalorder %s267_s30, %s367_s5  ;;  %p372_p2 = scmp.lt.s32.totalorder %s267_s30, %s267_s30 }
  0xf1   :  { %p373_p3 = scmp.lt.s32.totalorder %s371_s6, %s367_s5 }
  0xf3   :  { %p374_p4 = por %p373_p3, %p372_p2 }
  0xf5   :  { %p375_p5 = pnand %p374_p4, %p368_p1 }
  0xf7   :  { %378 = shalt.err (!%p375_p5)
}
  0xf8   :  { %269 = dma.vmem_to_hbm [thread:$0]  %s267_s30, 16, %s485_s4, [#allocation9]   ;;  %v213_v35 = vld [vmem:[#allocation7] sm:$0x1] }
  0xf9   :  { %s420_s9 = smov [#allocation7]  }
  0xfa   :  { %s246_s10 = sshll.u32 %s420_s9, 4  ;;  %s247_s10 = int_to_ptr.vmem [resolvable:$true] %s246_s10 }
  0xfb   :  { %s387_s4 = scalar_lea.vmem %s247_s10, 16  ;;  %s391_s11 = scalar_lea.vmem %s247_s10, 32 }
  0xfc   :  { %p388_p6 = scmp.ne.s32.totalorder %s247_s10, %s387_s4  ;;  %p392_p7 = scmp.lt.s32.totalorder %s247_s10, %s247_s10 }
  0xfd   :  { %p393_p8 = scmp.lt.s32.totalorder %s391_s11, %s387_s4 }
  0xff   :  { %p394_p9 = por %p393_p8, %p392_p7 }
 0x101   :  { %p395_p10 = pnand %p394_p9, %p388_p6 }
 0x173   :  { %v219_v18 = vpop.xlane.xlu1 %218 }
 0x174   :  { %v220_v29 = vrot.slane %v219_v18, 4 }
 0x176   :  { %v221_v30 = vadd.f32 %v220_v29, %v219_v18 }
 0x178   :  { %v222_v31 = vrot.slane %v221_v30, 2 }
 0x17a   :  { %v223_v32 = vadd.f32 %v222_v31, %v221_v30 }
 0x17c   :  { %v224_v33 = vrot.slane %v223_v32, 1 }
 0x17e   :  { %v225_v34 = vadd.f32 %v224_v33, %v223_v32 }
 0x180   :  { %287 = vpush %v225_v34 }
 0x1b1   :  { %s288_s3 = spop %287 }
 0x1b2   :  { %v227_v36 = vstv %s288_s3 }
 0x1b3   :  { %v228_v37 = vadd.f32 %v227_v36, %v213_v35 }
 0x1b5   :  { %230 = vst.msk [vmem:[#allocation7] sm:$0x1] %vm211_vm12, %v228_v37 }
 0x1bc   :  { %v234_v38 = vld [vmem:[#allocation7] sm:$0x1] }
 0x1bd   :  { %v236_v39 = vmul.f32 0.125, %v234_v38 }
 0x1bf   :  { %237 = vst.msk [vmem:[#allocation7] sm:$0x1] %vm211_vm12, %v236_v39 }
 0x1c0   :  { %398 = shalt.err (!%p395_p10)
}
 0x1c1   :  { %249 = dma.vmem_to_hbm [thread:$0]  %s247_s10, 16, %s483_s2, [#allocation4]  }
 0x1c2   :  { %411 = dma.done.wait [#allocation4], 16  }
 0x1c3   :  { %412 = vsyncadd [#allocation4], 4294967280 }
 0x1c4   :  { %413 = dma.done.wait [#allocation9], 32  }
 0x1c5   :  { %414 = vsyncadd [#allocation9], 4294967264 }
 0x1c6   :  { %279 = vsyncpa [#allocation3], 1 }
 0x1c7   :  { %280 = vsyncpa [#allocation6], 1 }
 0x1c8   :  { %281 = vsyncpa [#allocation4], 1 }
 0x1c9   :  { %282 = vsyncpa [#allocation9], 1 }

</bundles_post_ra>
